<compile_context>
chip_gen: v7x
topology: tpu7x:2x2x1
jax: 0.10.0
libtpu: 0.0.40
codegen_flags: <defaults>
</compile_context>

<pallas_src>
import jax
import jax.numpy as jnp
from jax import lax
from jax.experimental import pallas as pl
from jax.experimental.pallas import tpu as pltpu


# ----------------------------------------------------------------------------
# Prologue kernel: i-invariant work (global feature + start/end projections)
# ----------------------------------------------------------------------------
def _make_prologue_kernel(L, B, Hp):
    LB = L * B

    def kernel(h1_ref, h2_ref, wn1_ref, wn2_ref, bn_ref,
               w1ab_ref, w1c_ref, b1_ref, st_ref, en_ref):
        h2 = h2_ref[...]
        # global feature: g[b] = max_l tanh(h1 @ wn1 + h2 @ wn2 + bn)
        z = jnp.tanh(
            jnp.dot(h1_ref[...], wn1_ref[...], preferred_element_type=jnp.float32)
            + jnp.dot(h2, wn2_ref[...], preferred_element_type=jnp.float32)
            + bn_ref[...])
        g = jnp.max(z.reshape(L, B, Hp), axis=0)                         # (B, Hp)
        gc = (jnp.dot(g.astype(w1c_ref.dtype), w1c_ref[...],
                      preferred_element_type=jnp.float32)
              + b1_ref[...])                                             # (B, Hp)
        # fused start/end projection: one (LB, Hp) @ (Hp, 2Hp) MXU push
        pab = jnp.dot(h2, w1ab_ref[...], preferred_element_type=jnp.float32)
        # fold (g @ w1c + b1) into the start-side term (added once per pair)
        st_ref[...] = (pab[:, :Hp].reshape(L, B, Hp) + gc[None, :, :]).reshape(LB, Hp)
        en_ref[...] = pab[:, Hp:]

    return kernel


# ----------------------------------------------------------------------------
# Main pairwise kernel: LN -> ELU -> hid2tag -> sigmoid -> mask, per (i,j) tile
# ----------------------------------------------------------------------------
def _make_pair_kernel(L, B, Hp, T, TI, TJ, inv_H, ew_dtype):
    def kernel(st_ref, en_ref, mask_ref, gamma_ref, beta_ref, w2_ref, b2_ref,
               out_ref):
        ib = pl.program_id(0)
        jb = pl.program_id(1)

        st = st_ref[...]                                         # (TI*B, Hp) f32
        en = en_ref[...]                                         # (TJ*B, Hp) f32

        # pairwise broadcast-add: pre[ti, tj, b, :] = st[ti, b, :] + en[tj, b, :]
        pre = (st.reshape(TI, 1, B, Hp)
               + en.reshape(1, TJ, B, Hp)).reshape(TI * TJ * B, Hp)

        # LayerNorm over the true hidden dim (pads are exactly zero; divide by H).
        mu = jnp.sum(pre, axis=-1, keepdims=True) * inv_H
        m2 = jnp.sum(pre * pre, axis=-1, keepdims=True) * inv_H
        var = m2 - mu * mu
        y = (pre - mu) * lax.rsqrt(var + 1e-5)
        y = y.astype(ew_dtype)
        y = y * gamma_ref[...].astype(ew_dtype) + beta_ref[...].astype(ew_dtype)
        # TODO(synk): nn.Dropout is identity here (eval-mode semantics).
        y = jnp.where(y > 0, y, jnp.expm1(jnp.minimum(y, 0)))    # ELU(alpha=1)

        logits = (jnp.dot(y.astype(w2_ref.dtype), w2_ref[...],
                          preferred_element_type=jnp.float32) + b2_ref[...])
        probs = jax.nn.sigmoid(logits)                           # (TI*TJ*B, T) f32

        # pair mask (j >= i) * mask[i,b] * mask[j,b] -- fully vectorized.
        i0 = pl.multiple_of(ib * TI, TI)
        j0 = pl.multiple_of(jb * TJ, TJ)
        m_i = mask_ref[pl.ds(i0, TI), :]                         # (TI, B)
        m_j = mask_ref[pl.ds(j0, TJ), :]                         # (TJ, B)
        ii = i0 + lax.broadcasted_iota(jnp.int32, (TI, TJ, B), 0)
        jj = j0 + lax.broadcasted_iota(jnp.int32, (TI, TJ, B), 1)
        tri = (jj >= ii).astype(jnp.float32)                     # (TI, TJ, B)
        mfull = tri * m_i[:, None, :] * m_j[None, :, :]          # (TI, TJ, B)

        masked = probs.reshape(TI, TJ, B, T) * mfull[..., None]
        out_ref[...] = masked.reshape(TI, TJ * B, T)             # single store

    return kernel


# ----------------------------------------------------------------------------
# Tile selection from a VMEM budget
# ----------------------------------------------------------------------------
def _auto_tile(L, B, Hp, T, budget_bytes):
    """Largest divisor d of L (sublane-aligned d*B) whose working set fits."""
    lane_T = ((T + 127) // 128) * 128
    valid = [d for d in range(L, 0, -1)
             if L % d == 0 and (d == L or (d * B) % 8 == 0)]
    for d in valid:
        rows = d * d * B
        est = (5 * rows * Hp * 4               # pre/y/logits live f32 intermediates
               + 4 * d * B * Hp * 4            # st/en input blocks, double-buffered
               + 2 * rows * lane_T * 4)        # lane-padded output block, 2 buffers
        if est <= budget_bytes:
            return d
    return valid[-1]


# ----------------------------------------------------------------------------
# Wrapper
# ----------------------------------------------------------------------------
def ner_unit_forward(h_ner1, h_ner2, mask, params, *,
                     block_i=None, block_j=None,
                     use_bf16_matmul=True,
                     elementwise_dtype=jnp.float32,
                     vmem_budget_bytes=32 << 20,
                     vmem_limit_bytes=48 << 20):
    # TODO(synk): token_pos masking branch of the PyTorch module is not
    # implemented (token_pos=None path only).
    L, B, H = h_ner2.shape
    T = params["w2"].shape[1]
    LB = L * B
    Hp = max(128, ((H + 127) // 128) * 128)       # lane-dense hidden dim (exact)
    mm_dtype = jnp.bfloat16 if use_bf16_matmul else jnp.float32

    TI = block_i if block_i is not None else _auto_tile(L, B, Hp, T, vmem_budget_bytes)
    TJ = block_j if block_j is not None else TI
    for t, name in ((TI, "block_i"), (TJ, "block_j")):
        assert L % t == 0, f"{name} must divide L"
        assert t == L or (t * B) % 8 == 0, f"{name}*B must be a multiple of 8"

    def pad_rc(a, r, c):
        return jnp.pad(a, ((0, r - a.shape[0]), (0, c - a.shape[1])))

    # Weight prep (zero-padding keeps the math exact; see kernel LN comment).
    w1 = params["w1"]                                           # (3H, H)
    w1a = pad_rc(w1[:H], Hp, Hp)
    w1b = pad_rc(w1[H:2 * H], Hp, Hp)
    w1ab = jnp.concatenate([w1a, w1b], axis=1).astype(mm_dtype)  # (Hp, 2Hp)
    w1c = pad_rc(w1[2 * H:], Hp, Hp).astype(mm_dtype)            # (Hp, Hp)
    wn = params["wn"]                                            # (2H, H)
    wn1 = pad_rc(wn[:H], Hp, Hp).astype(mm_dtype)
    wn2 = pad_rc(wn[H:], Hp, Hp).astype(mm_dtype)
    w2 = pad_rc(params["w2"], Hp, T).astype(mm_dtype)            # (Hp, T)
    bn = pad_rc(params["bn"], 1, Hp).astype(jnp.float32)
    b1 = pad_rc(params["b1"], 1, Hp).astype(jnp.float32)
    gamma = pad_rc(params["gamma"], 1, Hp).astype(jnp.float32)
    beta = pad_rc(params["beta"], 1, Hp).astype(jnp.float32)
    b2 = params["b2"].astype(jnp.float32)

    h1f = pad_rc(h_ner1.reshape(LB, H), LB, Hp).astype(mm_dtype)
    h2f = pad_rc(h_ner2.reshape(LB, H), LB, Hp).astype(mm_dtype)
    mask_f = mask.astype(jnp.float32)

    cparams_seq = pltpu.CompilerParams(dimension_semantics=("arbitrary",),
                                       vmem_limit_bytes=vmem_limit_bytes)
    cparams_par = pltpu.CompilerParams(dimension_semantics=("parallel", "parallel"),
                                       vmem_limit_bytes=vmem_limit_bytes)

    # ---- prologue: i-invariant projections (hoisted so the main grid is parallel)
    st_proj, en_proj = pl.pallas_call(
        _make_prologue_kernel(L, B, Hp),
        out_shape=(jax.ShapeDtypeStruct((LB, Hp), jnp.float32),
                   jax.ShapeDtypeStruct((LB, Hp), jnp.float32)),
        grid_spec=pltpu.PrefetchScalarGridSpec(
            num_scalar_prefetch=0,
            grid=(1,),
            in_specs=[
                pl.BlockSpec((LB, Hp), lambda i: (0, 0)),       # h1
                pl.BlockSpec((LB, Hp), lambda i: (0, 0)),       # h2
                pl.BlockSpec((Hp, Hp), lambda i: (0, 0)),       # wn1
                pl.BlockSpec((Hp, Hp), lambda i: (0, 0)),       # wn2
                pl.BlockSpec((1, Hp), lambda i: (0, 0)),        # bn
                pl.BlockSpec((Hp, 2 * Hp), lambda i: (0, 0)),   # w1ab
                pl.BlockSpec((Hp, Hp), lambda i: (0, 0)),       # w1c
                pl.BlockSpec((1, Hp), lambda i: (0, 0)),        # b1
            ],
            out_specs=[pl.BlockSpec((LB, Hp), lambda i: (0, 0)),
                       pl.BlockSpec((LB, Hp), lambda i: (0, 0))],
        ),
        compiler_params=cparams_seq,
    )(h1f, h2f, wn1, wn2, bn, w1ab, w1c, b1)

    # ---- main pairwise kernel on a fully parallel 2-D grid ----
    inv_H = 1.0 / float(H)
    pair_kernel = _make_pair_kernel(L, B, Hp, T, TI, TJ, inv_H, elementwise_dtype)

    out3 = pl.pallas_call(
        pair_kernel,
        out_shape=jax.ShapeDtypeStruct((L, LB, T), jnp.float32),
        grid_spec=pltpu.PrefetchScalarGridSpec(
            num_scalar_prefetch=0,
            grid=(L // TI, L // TJ),
            in_specs=[
                pl.BlockSpec((TI * B, Hp), lambda ib, jb: (ib, 0)),   # st block
                pl.BlockSpec((TJ * B, Hp), lambda ib, jb: (jb, 0)),   # en block
                pl.BlockSpec((L, B), lambda ib, jb: (0, 0)),          # mask
                pl.BlockSpec((1, Hp), lambda ib, jb: (0, 0)),         # gamma
                pl.BlockSpec((1, Hp), lambda ib, jb: (0, 0)),         # beta
                pl.BlockSpec((Hp, T), lambda ib, jb: (0, 0)),         # w2
                pl.BlockSpec((1, T), lambda ib, jb: (0, 0)),          # b2
            ],
            out_specs=pl.BlockSpec((TI, TJ * B, T), lambda ib, jb: (ib, jb, 0)),
        ),
        compiler_params=cparams_par,
    )(st_proj, en_proj, mask_f, gamma, beta, w2, b2)

    return out3.reshape(L, L, B, T)


# ----------------------------------------------------------------------------
# Pure-JAX reference (mirrors the PyTorch forward, dropout in eval mode)
# ----------------------------------------------------------------------------
def ner_unit_reference(h_ner1, h_ner2, mask, params):
    L, B, H = h_ner2.shape
    g = jnp.tanh(jnp.concatenate([h_ner1, h_ner2], -1) @ params["wn"] + params["bn"])
    g = jnp.max(g, axis=0)                                   # (B, H)
    st = jnp.broadcast_to(h_ner2[:, None], (L, L, B, H))
    en = jnp.broadcast_to(h_ner2[None, :], (L, L, B, H))
    gg = jnp.broadcast_to(g[None, None], (L, L, B, H))
    x = jnp.concatenate([st, en, gg], -1)
    y = x @ params["w1"] + params["b1"]
    mu = y.mean(-1, keepdims=True)
    var = ((y - mu) ** 2).mean(-1, keepdims=True)
    y = (y - mu) / jnp.sqrt(var + 1e-5) * params["gamma"] + params["beta"]
    y = jnp.where(y > 0, y, jnp.expm1(y))
    p = jax.nn.sigmoid(y @ params["w2"] + params["b2"])
    j = jnp.arange(L)
    diag = (j[None, :, None] >= j[:, None, None]).astype(jnp.float32)
    m = diag * mask[:, None, :] * mask[None, :, :]
    return p * m[..., None]


if __name__ == "__main__":
    L, B, H, T = 8, 2, 32, 8   # length, batch, hidden_size, len(ner2idx)

    key = jax.random.PRNGKey(0)
    ks = jax.random.split(key, 10)

    h_ner1 = jax.random.normal(ks[0], (L, B, H), jnp.float32)
    h_ner2 = jax.random.normal(ks[1], (L, B, H), jnp.float32)
    mask = (jax.random.uniform(ks[2], (L, B)) > 0.2).astype(jnp.float32)

    scale = 0.1
    params = {
        "wn": scale * jax.random.normal(ks[3], (2 * H, H), jnp.float32),
        "bn": scale * jax.random.normal(ks[4], (1, H), jnp.float32),
        "w1": scale * jax.random.normal(ks[5], (3 * H, H), jnp.float32),
        "b1": scale * jax.random.normal(ks[6], (1, H), jnp.float32),
        "gamma": jnp.ones((1, H), jnp.float32),
        "beta": jnp.zeros((1, H), jnp.float32),
        "w2": scale * jax.random.normal(ks[7], (H, T), jnp.float32),
        "b2": scale * jax.random.normal(ks[8], (1, T), jnp.float32),
    }

    ref = ner_unit_reference(h_ner1, h_ner2, mask, params)

    # 1) exact f32 path (VMEM-derived single-step grid).
    out = ner_unit_forward(h_ner1, h_ner2, mask, params, use_bf16_matmul=False)
    out = jax.block_until_ready(out)
    assert out.shape == (L, L, B, T), out.shape
    assert jnp.allclose(out, ref, atol=5e-4, rtol=5e-4), float(jnp.abs(out - ref).max())

    # 2) default path: bf16 MXU inputs, f32 accumulation, blocked parallel 2-D grid.
    out_bf = ner_unit_forward(h_ner1, h_ner2, mask, params, block_i=4, block_j=4)
    out_bf = jax.block_until_ready(out_bf)
    assert jnp.allclose(out_bf, ref, atol=2e-2, rtol=2e-2), \
        float(jnp.abs(out_bf - ref).max())

    # 3) bf16 elementwise pipeline (v6e/v7x oriented), loose tolerance.
    out_ew = ner_unit_forward(h_ner1, h_ner2, mask, params, block_i=4, block_j=4,
                              elementwise_dtype=jnp.bfloat16)
    out_ew = jax.block_until_ready(out_ew)
    assert jnp.allclose(out_ew, ref, atol=5e-2, rtol=5e-2), \
        float(jnp.abs(out_ew - ref).max())

    print("KERNEL_OK")
</pallas_src>

<mosaic_0001>
module attributes {stable_mosaic.version = 11 : i64} {
  func.func @kernel(%arg0: i32, %arg1: memref<16x128xf32, #tpu.memory_space<vmem>>, %arg2: memref<16x128xf32, #tpu.memory_space<vmem>>, %arg3: memref<128x128xf32, #tpu.memory_space<vmem>>, %arg4: memref<128x128xf32, #tpu.memory_space<vmem>>, %arg5: memref<1x128xf32, #tpu.memory_space<vmem>>, %arg6: memref<128x256xf32, #tpu.memory_space<vmem>>, %arg7: memref<128x128xf32, #tpu.memory_space<vmem>>, %arg8: memref<1x128xf32, #tpu.memory_space<vmem>>, %arg9: memref<16x128xf32, #tpu.memory_space<vmem>>, %arg10: memref<16x128xf32, #tpu.memory_space<vmem>>) attributes {dimension_semantics = [#tpu.dimension_semantics<arbitrary>], iteration_bounds = array<i64: 1>, scalar_prefetch = 0 : i64, scratch_operands = 0 : i64, tpu.core_type = #tpu.core_type<tc>, window_params = [{pipeline_mode = #tpu.pipeline_mode<synchronous>, transform_indices = @transform_0, window_bounds = array<i64: 16, 128>}, {pipeline_mode = #tpu.pipeline_mode<synchronous>, transform_indices = @transform_1, window_bounds = array<i64: 16, 128>}, {pipeline_mode = #tpu.pipeline_mode<synchronous>, transform_indices = @transform_2, window_bounds = array<i64: 128, 128>}, {pipeline_mode = #tpu.pipeline_mode<synchronous>, transform_indices = @transform_3, window_bounds = array<i64: 128, 128>}, {pipeline_mode = #tpu.pipeline_mode<synchronous>, transform_indices = @transform_4, window_bounds = array<i64: 1, 128>}, {pipeline_mode = #tpu.pipeline_mode<synchronous>, transform_indices = @transform_5, window_bounds = array<i64: 128, 256>}, {pipeline_mode = #tpu.pipeline_mode<synchronous>, transform_indices = @transform_6, window_bounds = array<i64: 128, 128>}, {pipeline_mode = #tpu.pipeline_mode<synchronous>, transform_indices = @transform_7, window_bounds = array<i64: 1, 128>}, {pipeline_mode = #tpu.pipeline_mode<synchronous>, transform_indices = @transform_8, window_bounds = array<i64: 16, 128>}, {pipeline_mode = #tpu.pipeline_mode<synchronous>, transform_indices = @transform_9, window_bounds = array<i64: 16, 128>}]} {
    %c0 = arith.constant 0 : index
    %c0_0 = arith.constant 0 : index
    %0 = vector.load %arg2[%c0, %c0_0] : memref<16x128xf32, #tpu.memory_space<vmem>>, vector<16x128xf32>
    %c0_1 = arith.constant 0 : index
    %c0_2 = arith.constant 0 : index
    %1 = vector.load %arg1[%c0_1, %c0_2] : memref<16x128xf32, #tpu.memory_space<vmem>>, vector<16x128xf32>
    %c0_3 = arith.constant 0 : index
    %c0_4 = arith.constant 0 : index
    %2 = vector.load %arg3[%c0_3, %c0_4] : memref<128x128xf32, #tpu.memory_space<vmem>>, vector<128x128xf32>
    %cst = arith.constant dense<0.000000e+00> : vector<16x128xf32>
    %3 = tpu.matmul %1, %2, %cst {dimension_numbers = #tpu.dot_dimension_numbers<[1], [0], [0], [1], [0, 0, 1, 1], [], []>} : vector<16x128xf32>, vector<128x128xf32>, vector<16x128xf32> -> vector<16x128xf32>
    %c0_5 = arith.constant 0 : index
    %c0_6 = arith.constant 0 : index
    %4 = vector.load %arg4[%c0_5, %c0_6] : memref<128x128xf32, #tpu.memory_space<vmem>>, vector<128x128xf32>
    %cst_7 = arith.constant dense<0.000000e+00> : vector<16x128xf32>
    %5 = tpu.matmul %0, %4, %cst_7 {dimension_numbers = #tpu.dot_dimension_numbers<[1], [0], [0], [1], [0, 0, 1, 1], [], []>} : vector<16x128xf32>, vector<128x128xf32>, vector<16x128xf32> -> vector<16x128xf32>
    %6 = arith.addf %3, %5 : vector<16x128xf32>
    %c0_8 = arith.constant 0 : index
    %c0_9 = arith.constant 0 : index
    %7 = vector.load %arg5[%c0_8, %c0_9] : memref<1x128xf32, #tpu.memory_space<vmem>>, vector<1x128xf32>
    %8 = vector.broadcast %7 : vector<1x128xf32> to vector<16x128xf32>
    %9 = arith.addf %6, %8 : vector<16x128xf32>
    %10 = math.tanh %9 : vector<16x128xf32>
    %11 = vector.shape_cast %10 : vector<16x128xf32> to vector<8x2x128xf32>
    %cst_10 = arith.constant dense<0xFF800000> : vector<2x128xf32>
    %12 = vector.multi_reduction <maximumf>, %11, %cst_10 [0] : vector<8x2x128xf32> to vector<2x128xf32>
    %c0_11 = arith.constant 0 : index
    %c0_12 = arith.constant 0 : index
    %13 = vector.load %arg7[%c0_11, %c0_12] : memref<128x128xf32, #tpu.memory_space<vmem>>, vector<128x128xf32>
    %cst_13 = arith.constant dense<0.000000e+00> : vector<2x128xf32>
    %14 = tpu.matmul %12, %13, %cst_13 {dimension_numbers = #tpu.dot_dimension_numbers<[1], [0], [0], [1], [0, 0, 1, 1], [], []>} : vector<2x128xf32>, vector<128x128xf32>, vector<2x128xf32> -> vector<2x128xf32>
    %c0_14 = arith.constant 0 : index
    %c0_15 = arith.constant 0 : index
    %15 = vector.load %arg8[%c0_14, %c0_15] : memref<1x128xf32, #tpu.memory_space<vmem>>, vector<1x128xf32>
    %16 = vector.broadcast %15 : vector<1x128xf32> to vector<2x128xf32>
    %17 = arith.addf %14, %16 : vector<2x128xf32>
    %c0_16 = arith.constant 0 : index
    %c0_17 = arith.constant 0 : index
    %18 = vector.load %arg6[%c0_16, %c0_17] : memref<128x256xf32, #tpu.memory_space<vmem>>, vector<128x256xf32>
    %cst_18 = arith.constant dense<0.000000e+00> : vector<16x256xf32>
    %19 = tpu.matmul %0, %18, %cst_18 {dimension_numbers = #tpu.dot_dimension_numbers<[1], [0], [0], [1], [0, 0, 1, 1], [], []>} : vector<16x128xf32>, vector<128x256xf32>, vector<16x256xf32> -> vector<16x256xf32>
    %20 = vector.extract_strided_slice %19 {offsets = [0, 0], sizes = [16, 128], strides = [1, 1]} : vector<16x256xf32> to vector<16x128xf32>
    %21 = vector.shape_cast %20 : vector<16x128xf32> to vector<8x2x128xf32>
    %22 = vector.shape_cast %17 : vector<2x128xf32> to vector<1x2x128xf32>
    %23 = vector.broadcast %22 : vector<1x2x128xf32> to vector<8x2x128xf32>
    %24 = arith.addf %21, %23 : vector<8x2x128xf32>
    %25 = vector.shape_cast %24 : vector<8x2x128xf32> to vector<16x128xf32>
    %c0_19 = arith.constant 0 : index
    %c0_20 = arith.constant 0 : index
    %26 = vector.load %arg9[%c0_19, %c0_20] : memref<16x128xf32, #tpu.memory_space<vmem>>, vector<16x128xf32>
    tpu.vector_store %arg9[%c0_19, %c0_20], %25 {strides = array<i32>} : memref<16x128xf32, #tpu.memory_space<vmem>>, vector<16x128xf32>,
    %27 = vector.extract_strided_slice %19 {offsets = [0, 128], sizes = [16, 128], strides = [1, 1]} : vector<16x256xf32> to vector<16x128xf32>
    %c0_21 = arith.constant 0 : index
    %c0_22 = arith.constant 0 : index
    %28 = vector.load %arg10[%c0_21, %c0_22] : memref<16x128xf32, #tpu.memory_space<vmem>>, vector<16x128xf32>
    tpu.vector_store %arg10[%c0_21, %c0_22], %27 {strides = array<i32>} : memref<16x128xf32, #tpu.memory_space<vmem>>, vector<16x128xf32>,
    return
  }
  func.func @transform_0(%arg0: i32) -> (i32, i32) {
    %c0_i32 = arith.constant 0 : i32
    %c0_i32_0 = arith.constant 0 : i32
    %c0_i32_1 = arith.constant 0 : i32
    return %c0_i32, %c0_i32_0 : i32, i32
  }
  func.func @transform_1(%arg0: i32) -> (i32, i32) {
    %c0_i32 = arith.constant 0 : i32
    %c0_i32_0 = arith.constant 0 : i32
    %c0_i32_1 = arith.constant 0 : i32
    return %c0_i32, %c0_i32_0 : i32, i32
  }
  func.func @transform_2(%arg0: i32) -> (i32, i32) {
    %c0_i32 = arith.constant 0 : i32
    %c0_i32_0 = arith.constant 0 : i32
    %c0_i32_1 = arith.constant 0 : i32
    return %c0_i32, %c0_i32_0 : i32, i32
  }
  func.func @transform_3(%arg0: i32) -> (i32, i32) {
    %c0_i32 = arith.constant 0 : i32
    %c0_i32_0 = arith.constant 0 : i32
    %c0_i32_1 = arith.constant 0 : i32
    return %c0_i32, %c0_i32_0 : i32, i32
  }
  func.func @transform_4(%arg0: i32) -> (i32, i32) {
    %c0_i32 = arith.constant 0 : i32
    %c0_i32_0 = arith.constant 0 : i32
    %c0_i32_1 = arith.constant 0 : i32
    return %c0_i32, %c0_i32_0 : i32, i32
  }
  func.func @transform_5(%arg0: i32) -> (i32, i32) {
    %c0_i32 = arith.constant 0 : i32
    %c0_i32_0 = arith.constant 0 : i32
    %c0_i32_1 = arith.constant 0 : i32
    return %c0_i32, %c0_i32_0 : i32, i32
  }
  func.func @transform_6(%arg0: i32) -> (i32, i32) {
    %c0_i32 = arith.constant 0 : i32
    %c0_i32_0 = arith.constant 0 : i32
    %c0_i32_1 = arith.constant 0 : i32
    return %c0_i32, %c0_i32_0 : i32, i32
  }
  func.func @transform_7(%arg0: i32) -> (i32, i32) {
    %c0_i32 = arith.constant 0 : i32
    %c0_i32_0 = arith.constant 0 : i32
    %c0_i32_1 = arith.constant 0 : i32
    return %c0_i32, %c0_i32_0 : i32, i32
  }
  func.func @transform_8(%arg0: i32) -> (i32, i32) {
    %c0_i32 = arith.constant 0 : i32
    %c0_i32_0 = arith.constant 0 : i32
    %c0_i32_1 = arith.constant 0 : i32
    return %c0_i32, %c0_i32_0 : i32, i32
  }
  func.func @transform_9(%arg0: i32) -> (i32, i32) {
    %c0_i32 = arith.constant 0 : i32
    %c0_i32_0 = arith.constant 0 : i32
    %c0_i32_1 = arith.constant 0 : i32
    return %c0_i32, %c0_i32_0 : i32, i32
  }
}

</mosaic_0001>

<bundles_post_ra>
// kernel: tpu_custom_call.1
= control target key start
LH: loop header
LB: loop body
LE: loop exit
PB: predicated region body
PF: predicated region fallthrough
CT: control target
= control target key end

     0   :  { %15 = vsyncpa [#allocation3], 0  ;;  %s1444_s0 = inlined_call_operand.hbm [shape: f32[16,128], index: 0, kind: input, shape index: {}]   ;;  %s1445_s1 = inlined_call_operand.hbm [shape: f32[16,128], index: 1, kind: input, shape index: {}]   ;;  %s1446_s2 = inlined_call_operand.hbm [shape: f32[128,128], index: 2, kind: input, shape index: {}]   ;;  %s1447_s3 = inlined_call_operand.hbm [shape: f32[128,128], index: 3, kind: input, shape index: {}]   ;;  %s1448_s4 = inlined_call_operand.vmem [shape: f32[1,128], index: 4, kind: input, shape index: {}]   ;;  %s1449_s5 = inlined_call_operand.hbm [shape: f32[128,256], index: 5, kind: input, shape index: {}]   ;;  %s1450_s6 = inlined_call_operand.hbm [shape: f32[128,128], index: 6, kind: input, shape index: {}]   ;;  %s1451_s7 = inlined_call_operand.vmem [shape: f32[1,128], index: 7, kind: input, shape index: {}]   ;;  %s1452_s8 = inlined_call_operand.hbm [shape: f32[16,128], index: 8, kind: output, shape index: {0}]   ;;  %s1453_s9 = inlined_call_operand.hbm [shape: f32[16,128], index: 9, kind: output, shape index: {1}]  }
   0x1   :  { %16 = vsyncpa [#allocation6], 0 }
   0x2   :  { %17 = vsyncpa [#allocation9], 0 }
   0x3   :  { %18 = vsyncpa [#allocation12], 0 }
   0x4   :  { %19 = vsyncpa [#allocation4], 0 }
   0x5   :  { %20 = vsyncpa [#allocation15], 0  ;;  %s1200_s30 = smov [#allocation5]   ;;  %s1201_s11 = smov [#allocation8]  }
   0x6   :  { %s38_s10 = sshll.u32 %s1200_s30, 4  ;;  %s62_s12 = sshll.u32 %s1201_s11, 4  ;;  %s39_s10 = int_to_ptr.vmem [resolvable:$true] %s38_s10  ;;  %s1266_s12 = int_to_ptr.vmem [resolvable:$true] %s62_s12 }
   0x7   :  { %s1012_s15 = scalar_lea.hbm %s1445_s1, 256 }
   0x8   :  { %p1013_p0 = scmp.ne.s32.totalorder %s1445_s1, %s1012_s15  ;;  %p1016_p1 = scmp.lt.u32.totalorder %s1012_s15, %s1445_s1 }
   0xa   :  { %p1018_p2 = pnand %p1016_p1, %p1013_p0 }
   0xc   :  { %1021 = shalt.err (!%p1018_p2)
}
   0xd   :  { %s1022_s20 = scalar_lea.vmem %s39_s10, 256  ;;  %p1027_p4 = scmp.lt.s32.totalorder %s39_s10, %s39_s10 }
   0xe   :  { %p1023_p3 = scmp.ne.s32.totalorder %s39_s10, %s1022_s20  ;;  %p1028_p5 = scmp.lt.s32.totalorder %s1022_s20, %s1022_s20 }
  0x10   :  { %p1029_p6 = por %p1028_p5, %p1027_p4 }
  0x12   :  { %p1030_p7 = pnand %p1029_p6, %p1023_p3 }
  0x14   :  { %1033 = shalt.err (!%p1030_p7)
}
  0x15   :  { %s1202_s21 = smov 128   ;;  %s1203_s22 = smov 8  }
  0x16   :  { %44 = dma.hbm_to_vmem [thread:$0]  %s1445_s1, 256, %s39_s10, [#allocation6], %s1202_s21, %s1202_s21, %s1203_s22  }
  0x17   :  { %s1034_s27 = scalar_lea.hbm %s1447_s3, 2048 }
  0x18   :  { %p1035_p8 = scmp.ne.s32.totalorder %s1447_s3, %s1034_s27  ;;  %p1038_p9 = scmp.lt.u32.totalorder %s1034_s27, %s1447_s3 }
  0x1a   :  { %p1040_p10 = pnand %p1038_p9, %p1035_p8 }
  0x1c   :  { %1043 = shalt.err (!%p1040_p10)
}
  0x1d   :  { %s1044_s13 = scalar_lea.vmem %s1266_s12, 2048  ;;  %p1049_p12 = scmp.lt.s32.totalorder %s1266_s12, %s1266_s12 }
  0x1e   :  { %p1045_p11 = scmp.ne.s32.totalorder %s1266_s12, %s1044_s13  ;;  %p1050_p13 = scmp.lt.s32.totalorder %s1044_s13, %s1044_s13 }
  0x20   :  { %p1051_p0 = por %p1050_p13, %p1049_p12 }
  0x22   :  { %p1052_p1 = pnand %p1051_p0, %p1045_p11 }
  0x24   :  { %1055 = shalt.err (!%p1052_p1)
}
  0x25   :  { %68 = dma.hbm_to_vmem [thread:$0]  %s1447_s3, 2048, %s1266_s12, [#allocation9], %s1202_s21, %s1202_s21, %s1203_s22  }
  0x26   :  { %s1204_s14 = smov [#allocation2]   ;;  %s1205_s16 = smov [#allocation7]  }
  0x27   :  { %s26_s15 = sshll.u32 %s1204_s14, 4  ;;  %s50_s17 = sshll.u32 %s1205_s16, 4  ;;  %s27_s15 = int_to_ptr.vmem [resolvable:$true] %s26_s15  ;;  %s1303_s17 = int_to_ptr.vmem [resolvable:$true] %s50_s17 }
  0x28   :  { %s1056_s20 = scalar_lea.hbm %s1444_s0, 256 }
  0x29   :  { %p1057_p2 = scmp.ne.s32.totalorder %s1444_s0, %s1056_s20  ;;  %p1060_p3 = scmp.lt.u32.totalorder %s1056_s20, %s1444_s0 }
  0x2b   :  { %p1062_p4 = pnand %p1060_p3, %p1057_p2 }
  0x2d   :  { %1065 = shalt.err (!%p1062_p4)
}
  0x2e   :  { %s1066_s3 = scalar_lea.vmem %s27_s15, 256  ;;  %p1071_p6 = scmp.lt.s32.totalorder %s27_s15, %s27_s15 }
  0x2f   :  { %p1067_p5 = scmp.ne.s32.totalorder %s27_s15, %s1066_s3  ;;  %p1072_p7 = scmp.lt.s32.totalorder %s1066_s3, %s1066_s3 }
  0x31   :  { %p1073_p8 = por %p1072_p7, %p1071_p6 }
  0x33   :  { %p1074_p9 = pnand %p1073_p8, %p1067_p5 }
  0x35   :  { %1077 = shalt.err (!%p1074_p9)
}
  0x36   :  { %32 = dma.hbm_to_vmem [thread:$0]  %s1444_s0, 256, %s27_s15, [#allocation3], %s1202_s21, %s1202_s21, %s1203_s22  }
  0x37   :  { %s1078_s30 = scalar_lea.hbm %s1446_s2, 2048 }
  0x38   :  { %p1079_p10 = scmp.ne.s32.totalorder %s1446_s2, %s1078_s30  ;;  %p1082_p11 = scmp.lt.u32.totalorder %s1078_s30, %s1446_s2 }
  0x3a   :  { %p1084_p12 = pnand %p1082_p11, %p1079_p10 }
  0x3c   :  { %1087 = shalt.err (!%p1084_p12)
}
  0x3d   :  { %s1088_s14 = scalar_lea.vmem %s1303_s17, 2048  ;;  %p1093_p0 = scmp.lt.s32.totalorder %s1303_s17, %s1303_s17 }
  0x3e   :  { %p1089_p13 = scmp.ne.s32.totalorder %s1303_s17, %s1088_s14  ;;  %p1094_p1 = scmp.lt.s32.totalorder %s1088_s14, %s1088_s14 }
  0x40   :  { %p1095_p2 = por %p1094_p1, %p1093_p0 }
  0x42   :  { %p1096_p3 = pnand %p1095_p2, %p1089_p13 }
  0x44   :  { %1099 = shalt.err (!%p1096_p3)
}
  0x45   :  { %56 = dma.hbm_to_vmem [thread:$0]  %s1446_s2, 2048, %s1303_s17, [#allocation6], %s1202_s21, %s1202_s21, %s1203_s22  }
  0x46   :  { %s1206_s16 = smov [#allocation10]   ;;  %s1100_s23 = scalar_lea.hbm %s1449_s5, 4096 }
  0x47   :  { %s76_s18 = sshll.u32 %s1206_s16, 4  ;;  %p1101_p4 = scmp.ne.s32.totalorder %s1449_s5, %s1100_s23  ;;  %s77_s18 = int_to_ptr.vmem [resolvable:$true] %s76_s18 }
  0x48   :  { %p1104_p5 = scmp.lt.u32.totalorder %s1100_s23, %s1449_s5 }
  0x4a   :  { %p1106_p6 = pnand %p1104_p5, %p1101_p4 }
  0x4c   :  { %1109 = shalt.err (!%p1106_p6)
}
  0x4d   :  { %s1110_s12 = scalar_lea.vmem %s77_s18, 4096  ;;  %p1115_p8 = scmp.lt.s32.totalorder %s77_s18, %s77_s18 }
  0x4e   :  { %p1111_p7 = scmp.ne.s32.totalorder %s77_s18, %s1110_s12  ;;  %p1116_p9 = scmp.lt.s32.totalorder %s1110_s12, %s1110_s12 }
  0x50   :  { %p1117_p10 = por %p1116_p9, %p1115_p8 }
  0x52   :  { %p1118_p11 = pnand %p1117_p10, %p1111_p7 }
  0x54   :  { %1121 = shalt.err (!%p1118_p11)
}
  0x55   :  { %s1207_s2 = smov 256   ;;  %s1208_s17 = smov 16  }
  0x56   :  { %82 = dma.hbm_to_vmem [thread:$0]  %s1449_s5, 4096, %s77_s18, [#allocation9], %s1207_s2, %s1207_s2, %s1208_s17  }
  0x57   :  { %s1209_s29 = smov [#allocation11]   ;;  %s1122_s1 = scalar_lea.hbm %s1450_s6, 2048 }
  0x58   :  { %s88_s30 = sshll.u32 %s1209_s29, 4  ;;  %p1123_p12 = scmp.ne.s32.totalorder %s1450_s6, %s1122_s1  ;;  %s89_s30 = int_to_ptr.vmem [resolvable:$true] %s88_s30 }
  0x59   :  { %p1126_p13 = scmp.lt.u32.totalorder %s1122_s1, %s1450_s6 }
  0x5b   :  { %p1128_p0 = pnand %p1126_p13, %p1123_p12 }
  0x5d   :  { %1131 = shalt.err (!%p1128_p0)
}
  0x5e   :  { %s1132_s16 = scalar_lea.vmem %s89_s30, 2048  ;;  %p1137_p2 = scmp.lt.s32.totalorder %s89_s30, %s89_s30 }
  0x5f   :  { %p1133_p1 = scmp.ne.s32.totalorder %s89_s30, %s1132_s16  ;;  %p1138_p3 = scmp.lt.s32.totalorder %s1132_s16, %s1132_s16 }
  0x61   :  { %p1139_p4 = por %p1138_p3, %p1137_p2 }
  0x63   :  { %p1140_p5 = pnand %p1139_p4, %p1133_p1 }
  0x65   :  { %1143 = shalt.err (!%p1140_p5)
}
  0x66   :  { %94 = dma.hbm_to_vmem [thread:$0]  %s1450_s6, 2048, %s89_s30, [#allocation12], %s1202_s21, %s1202_s21, %s1203_s22  }
  0x67   :  { %1188 = dma.done.wait [#allocation3], 256  }
  0x68   :  { %1189 = vsyncadd [#allocation3], 4294967040 }
  0x69   :  { %1190 = dma.done.wait [#allocation6], 2304  }
  0x6a   :  { %1191 = vsyncadd [#allocation6], 4294964992 }
  0x6b   :  { %1192 = dma.done.wait [#allocation9], 6144  }
  0x6c   :  { %1193 = vsyncadd [#allocation9], 4294961152 }
  0x6d   :  { %1194 = dma.done.wait [#allocation12], 2048  }
  0x6e   :  { %1195 = vsyncadd [#allocation12], 4294965248  ;;  %v1210_v0 = vmov 0.0|0.0   ;;  %v135_v1 = vld [vmem:[#allocation8] sm:$0xff]  ;;  %v136_v2 = vld [vmem:[#allocation8 + $0x8] sm:$0xff]  ;;  %vm1211_vm0 = vmmov 0  }
  0x6f   :  { %934 = vmatprep.subr.bf16.mxu1 %v1210_v0  ;;  %v137_v3 = vld [vmem:[#allocation8 + $0x10] sm:$0xff]  ;;  %v870_v4 = vpack.c.bf16 %v136_v2, %v135_v1  ;;  %v138_v5 = vld [vmem:[#allocation8 + $0x18] sm:$0xff]  ;;  %v139_v7 = vld [vmem:[#allocation8 + $0x20] sm:$0xff]  ;;  %vm356_vm1 = vcmask 1041408   ;;  %s1214_s23 = smov [#allocation14]  }
  0x70   :  { %v874_v6 = vpack.c.bf16 %v138_v5, %v137_v3  ;;  %v140_v8 = vld [vmem:[#allocation8 + $0x28] sm:$0xff]  ;;  %v1368_v10 = vld [vmem:[#allocation5] sm:$0xff]  ;;  %v142_v12 = vld [vmem:[#allocation8 + $0x38] sm:$0xff]  ;;  %s691_s24 = sshll.u32 %s1214_s23, 4  ;;  %s692_s24 = int_to_ptr.vmem [resolvable:$true] %s691_s24 }
  0x71   :  { %871 = vmatprep.subr.bf16.mxu0 %v870_v4  ;;  %v878_v9 = vpack.c.bf16 %v140_v8, %v139_v7  ;;  %v141_v11 = vld [vmem:[#allocation8 + $0x30] sm:$0xff]  ;;  %797 = vmatprep.mubr.f32.mxu0 %v1368_v10  ;;  %v143_v14 = vld [vmem:[#allocation8 + $0x40] sm:$0xff]  ;;  %v144_v15 = vld [vmem:[#allocation8 + $0x48] sm:$0xff]  ;;  %p1149_p7 = scmp.lt.s32.totalorder %s692_s24, %s692_s24 }
  0x72   :  { %873 = vmatpush3.bf16.msra.mxu0 %v870_v4  ;;  %v882_v13 = vpack.c.bf16 %v142_v12, %v141_v11  ;;  %v372_v16 = vld [vmem:[#allocation11] sm:$0xff]  ;;  %v373_v17 = vld [vmem:[#allocation11 + $0x8] sm:$0xff]  ;;  %v886_v18 = vpack.c.bf16 %v144_v15, %v143_v14  ;;  %v145_v20 = vld [vmem:[#allocation8 + $0x50] sm:$0xff]  ;;  %v1212_v12 = vmov 0.0  }
  0x73   :  { %875 = vmatprep.subr.bf16.mxu0 %v874_v6  ;;  %v935_v19 = vpack.c.bf16 %v373_v17, %v372_v16  ;;  %v146_v21 = vld [vmem:[#allocation8 + $0x58] sm:$0xff]  ;;  %v147_v23 = vld [vmem:[#allocation8 + $0x60] sm:$0xff]  ;;  %v148_v24 = vld [vmem:[#allocation8 + $0x68] sm:$0xff]  ;;  %867 = vmatprep.mubr.msk.f32.mxu1 %vm1211_vm0, %v1212_v12 }
  0x74   :  { %v890_v22 = vpack.c.bf16 %v146_v21, %v145_v20  ;;  %v894_v25 = vpack.c.bf16 %v148_v24, %v147_v23  ;;  %v149_v26 = vld [vmem:[#allocation8 + $0x70] sm:$0xff]  ;;  %v150_v27 = vld [vmem:[#allocation8 + $0x78] sm:$0xff]  ;;  %v119_v29 = vld [vmem:[#allocation7] sm:$0xff]  ;;  %v1213_v24 = vmov 1983009808  }
  0x75   :  { %936 = vmatpush3.bf16.msra.mxu1 %v935_v19  ;;  %v898_v28 = vpack.c.bf16 %v150_v27, %v149_v26  ;;  %v120_v30 = vld [vmem:[#allocation7 + $0x8] sm:$0xff]  ;;  %v121_v32 = vld [vmem:[#allocation7 + $0x10] sm:$0xff]  ;;  %v122_v33 = vld [vmem:[#allocation7 + $0x18] sm:$0xff]  ;;  %v318_v26 = vlaneseq }
  0x76   :  { %877 = vmatpush3.bf16.msra.mxu0 %v874_v6  ;;  %937 = vmatprep.subr.bf16.mxu1 %v1210_v0  ;;  %v902_v31 = vpack.c.bf16 %v120_v30, %v119_v29  ;;  %v1372_v34 = vld [vmem:[#allocation5 + $0x8] sm:$0xff]  ;;  %v906_v35 = vpack.c.bf16 %v122_v33, %v121_v32  ;;  %v117_v36 = vld [vmem:[#allocation2] sm:$0xff]  ;;  %v124_v38 = vld [vmem:[#allocation7 + $0x28] sm:$0xff] }
  0x77   :  { %879 = vmatprep.subr.bf16.mxu0 %v878_v9  ;;  %v123_v37 = vld [vmem:[#allocation7 + $0x20] sm:$0xff]  ;;  %v125_v40 = vld [vmem:[#allocation7 + $0x30] sm:$0xff]  ;;  %v126_v41 = vld [vmem:[#allocation7 + $0x38] sm:$0xff] }
  0x78   :  { %v910_v39 = vpack.c.bf16 %v124_v38, %v123_v37  ;;  %v914_v42 = vpack.c.bf16 %v126_v41, %v125_v40  ;;  %v127_v43 = vld [vmem:[#allocation7 + $0x40] sm:$0xff]  ;;  %v128_v44 = vld [vmem:[#allocation7 + $0x48] sm:$0xff]  ;;  %v129_v46 = vld [vmem:[#allocation7 + $0x50] sm:$0xff] }
  0x79   :  { %v918_v45 = vpack.c.bf16 %v128_v44, %v127_v43  ;;  %v130_v47 = vld [vmem:[#allocation7 + $0x58] sm:$0xff]  ;;  %v131_v49 = vld [vmem:[#allocation7 + $0x60] sm:$0xff]  ;;  %v132_v50 = vld [vmem:[#allocation7 + $0x68] sm:$0xff] }
  0x7a   :  { %881 = vmatpush3.bf16.msra.mxu0 %v878_v9  ;;  %v922_v48 = vpack.c.bf16 %v130_v47, %v129_v46  ;;  %v926_v51 = vpack.c.bf16 %v132_v50, %v131_v49  ;;  %v133_v52 = vld [vmem:[#allocation7 + $0x70] sm:$0xff]  ;;  %v134_v53 = vld [vmem:[#allocation7 + $0x78] sm:$0xff]  ;;  %v118_v55 = vld [vmem:[#allocation2 + $0x8] sm:$0xff] }
  0x7b   :  { %883 = vmatprep.subr.bf16.mxu0 %v882_v13  ;;  %v930_v54 = vpack.c.bf16 %v134_v53, %v133_v52  ;;  %v374_v56 = vld [vmem:[#allocation11 + $0x10] sm:$0xff]  ;;  %v375_v57 = vld [vmem:[#allocation11 + $0x18] sm:$0xff]  ;;  %v376_v59 = vld [vmem:[#allocation11 + $0x20] sm:$0xff] }
  0x7c   :  { %v938_v58 = vpack.c.bf16 %v375_v57, %v374_v56  ;;  %v377_v60 = vld [vmem:[#allocation11 + $0x28] sm:$0xff]  ;;  %v378_v62 = vld [vmem:[#allocation11 + $0x30] sm:$0xff]  ;;  %v379_v63 = vld [vmem:[#allocation11 + $0x38] sm:$0xff] }
  0x7d   :  { %v941_v61 = vpack.c.bf16 %v377_v60, %v376_v59  ;;  %v944_v1 = vpack.c.bf16 %v379_v63, %v378_v62  ;;  %v380_v2 = vld [vmem:[#allocation11 + $0x40] sm:$0xff]  ;;  %v381_v3 = vld [vmem:[#allocation11 + $0x48] sm:$0xff]  ;;  %v382_v5 = vld [vmem:[#allocation11 + $0x50] sm:$0xff] }
  0x7e   :  { %885 = vmatpush3.bf16.msra.mxu0 %v882_v13  ;;  %939 = vmatpush3.bf16.msra.mxu1 %v938_v58  ;;  %v947_v4 = vpack.c.bf16 %v381_v3, %v380_v2  ;;  %v383_v6 = vld [vmem:[#allocation11 + $0x58] sm:$0xff]  ;;  %v384_v8 = vld [vmem:[#allocation11 + $0x60] sm:$0xff]  ;;  %v385_v9 = vld [vmem:[#allocation11 + $0x68] sm:$0xff] }
  0x7f   :  { %887 = vmatprep.subr.bf16.mxu0 %v886_v18  ;;  %940 = vmatprep.subr.bf16.mxu1 %v1210_v0  ;;  %v950_v7 = vpack.c.bf16 %v383_v6, %v382_v5  ;;  %v953_v11 = vpack.c.bf16 %v385_v9, %v384_v8  ;;  %v386_v13 = vld [vmem:[#allocation11 + $0x70] sm:$0xff]  ;;  %v387_v14 = vld [vmem:[#allocation11 + $0x78] sm:$0xff]  ;;  %v466_v15 = vld [vmem:[#allocation10 + $0x8] sm:$0xff] }
  0x80   :  { %v468_v16 = vld [vmem:[#allocation10 + $0x18] sm:$0xff]  ;;  %v956_v17 = vpack.c.bf16 %v387_v14, %v386_v13  ;;  %v710_v19 = vld [vmem:[%s1448_s4] ss:$0 sm:$0xff]  ;;  %v467_v56 = vld [vmem:[#allocation10 + $0x10] sm:$0xff] }
  0x81   :  { %v470_v57 = vld [vmem:[#allocation10 + $0x28] sm:$0xff]  ;;  %v472_v58 = vld [vmem:[#allocation10 + $0x38] sm:$0xff]  ;;  %v469_v63 = vld [vmem:[#allocation10 + $0x20] sm:$0xff] }
  0x82   :  { %889 = vmatpush3.bf16.msra.mxu0 %v886_v18  ;;  %942 = vmatpush3.bf16.msra.mxu1 %v941_v61  ;;  %v958_v18 = vpack.c.bf16 %v468_v16, %v466_v15  ;;  %v962_v62 = vpack.c.bf16 %v472_v58, %v470_v57  ;;  %v474_v2 = vld [vmem:[#allocation10 + $0x48] sm:$0xff]  ;;  %v476_v3 = vld [vmem:[#allocation10 + $0x58] sm:$0xff]  ;;  %v473_v6 = vld [vmem:[#allocation10 + $0x40] sm:$0xff] }
  0x83   :  { %891 = vmatprep.subr.bf16.mxu0 %v890_v22  ;;  %943 = vmatprep.subr.bf16.mxu1 %v1210_v0  ;;  %v966_v5 = vpack.c.bf16 %v476_v3, %v474_v2  ;;  %v478_v8 = vld [vmem:[#allocation10 + $0x68] sm:$0xff]  ;;  %v480_v9 = vld [vmem:[#allocation10 + $0x78] sm:$0xff]  ;;  %v477_v14 = vld [vmem:[#allocation10 + $0x60] sm:$0xff] }
  0x84   :  { %v970_v13 = vpack.c.bf16 %v480_v9, %v478_v8  ;;  %v479_v15 = vld [vmem:[#allocation10 + $0x70] sm:$0xff]  ;;  %v482_v16 = vld [vmem:[#allocation10 + $0x88] sm:$0xff] }
  0x86   :  { %893 = vmatpush3.bf16.msra.mxu0 %v890_v22  ;;  %945 = vmatpush3.bf16.msra.mxu1 %v944_v1  ;;  %v471_v1 = vld [vmem:[#allocation10 + $0x30] sm:$0xff] }
  0x87   :  { %895 = vmatprep.subr.bf16.mxu0 %v894_v25  ;;  %946 = vmatprep.subr.bf16.mxu1 %v1210_v0 }
  0x8a   :  { %897 = vmatpush3.bf16.msra.mxu0 %v894_v25  ;;  %948 = vmatpush3.bf16.msra.mxu1 %v947_v4  ;;  %v316_v25 = vunpack.c.l.s4 %v1213_v24  ;;  %v964_v4 = vpack.c.bf16 %v471_v1, %v469_v63 }
  0x8b   :  { %899 = vmatprep.subr.bf16.mxu0 %v898_v28  ;;  %949 = vmatprep.subr.bf16.mxu1 %v1210_v0 }
  0x8c   :  { %v317_v27 = vunpack.c.0.s8 %v316_v25 }
  0x8e   :  { %901 = vmatpush3.bf16.msra.mxu0 %v898_v28  ;;  %951 = vmatpush3.bf16.msra.mxu1 %v950_v7  ;;  %v319_v28 = vshrl.u32 %v318_v26, 7  ;;  %v475_v7 = vld [vmem:[#allocation10 + $0x50] sm:$0xff]  ;;  %v485_v26 = vld [vmem:[#allocation10 + $0xa0] sm:$0xff] }
  0x8f   :  { %903 = vmatprep.subr.bf16.mxu0 %v902_v31  ;;  %952 = vmatprep.subr.bf16.mxu1 %v1210_v0 }
  0x90   :  { %v1385_v29 = vsub.s32 %v317_v27, %v319_v28  ;;  %v487_v27 = vld [vmem:[#allocation10 + $0xb0] sm:$0xff]  ;;  %v490_v28 = vld [vmem:[#allocation10 + $0xc8] sm:$0xff] }
  0x91   :  { %798 = vmatmul.mubr.f32.vlgmr.msra.gmra.mrb[0].mxu0 %v1372_v34 }
  0x92   :  { %905 = vmatpush3.bf16.msra.mxu0 %v902_v31  ;;  %832 = vmatprep.mubr.f32.mxu0 %v117_v36 }
  0x93   :  { %907 = vmatprep.subr.bf16.mxu0 %v906_v35  ;;  %954 = vmatpush3.bf16.msra.mxu1 %v953_v11  ;;  %v968_v11 = vpack.c.bf16 %v475_v7, %v473_v6 }
  0x94   :  { %955 = vmatprep.subr.bf16.mxu1 %v1210_v0 }
  0x96   :  { %909 = vmatpush3.bf16.msra.mxu0 %v906_v35 }
  0x97   :  { %911 = vmatprep.subr.bf16.mxu0 %v910_v39  ;;  %957 = vmatpush3.bf16.msra.mxu1 %v956_v17  ;;  %v484_v17 = vld [vmem:[#allocation10 + $0x98] sm:$0xff] }
  0x98   :  { %959 = vmatprep.subr.bf16.mxu1 %v958_v18  ;;  %v972_v18 = vpack.c.bf16 %v479_v15, %v477_v14 }
  0x9a   :  { %913 = vmatpush3.bf16.msra.mxu0 %v910_v39 }
  0x9b   :  { %915 = vmatprep.subr.bf16.mxu0 %v914_v42 }
  0x9e   :  { %917 = vmatpush3.bf16.msra.mxu0 %v914_v42 }
  0x9f   :  { %919 = vmatprep.subr.bf16.mxu0 %v918_v45 }
  0xa2   :  { %921 = vmatpush3.bf16.msra.mxu0 %v918_v45 }
  0xa3   :  { %923 = vmatprep.subr.bf16.mxu0 %v922_v48 }
  0xa6   :  { %925 = vmatpush3.bf16.msra.mxu0 %v922_v48 }
  0xa7   :  { %927 = vmatprep.subr.bf16.mxu0 %v926_v51 }
  0xaa   :  { %929 = vmatpush3.bf16.msra.mxu0 %v926_v51 }
  0xab   :  { %931 = vmatprep.subr.bf16.mxu0 %v930_v54 }
  0xae   :  { %933 = vmatpush3.bf16.msra.mxu0 %v930_v54 }
  0xb1   :  { %833 = vmatmul.mubr.f32.vlgmr.msra.gmra.mrb[0].mxu0 %v118_v55  ;;  %v465_v55 = vld [vmem:[#allocation10] sm:$0xff] }
  0xb2   :  { %v960_v60 = vpack.c.bf16 %v467_v56, %v465_v55 }
 0x184   :  { %v834_v20 = vpop.f32.mrb[0].mxu0 }
 0x185   :  { %v309_v21 = vadd.f32 %v834_v20, %v710_v19  ;;  %v292_v22 = vpop.f32.mrb[1].mxu0  ;;  %v481_v20 = vld [vmem:[#allocation10 + $0x80] sm:$0xff] }
 0x186   :  { %v308_v23 = vadd.f32 %v710_v19, %v292_v22  ;;  %v974_v19 = vpack.c.bf16 %v484_v17, %v482_v16  ;;  %v486_v22 = vld [vmem:[#allocation10 + $0xa8] sm:$0xff] }
 0x187   :  { %1008 = vtanh.f32 %v309_v21  ;;  %v483_v21 = vld [vmem:[#allocation10 + $0x90] sm:$0xff] }
 0x188   :  { %1010 = vtanh.f32 %v308_v23  ;;  %v488_v23 = vld [vmem:[#allocation10 + $0xb8] sm:$0xff]  ;;  %v976_v24 = vpack.c.bf16 %v483_v21, %v481_v20 }
 0x189   :  { %v978_v25 = vpack.c.bf16 %v488_v23, %v486_v22 }
 0x191   :  { %v1009_v0 = vpop.eup %1008 }
 0x192   :  { %v1011_v30 = vpop.eup %1010  ;;  %v331_v31 = vcombine.high %v1009_v0, %v1009_v0  ;;  %v338_v32 = vrot.slane %v1009_v0, %v1385_v29  ;;  %v492_v0 = vld [vmem:[#allocation10 + $0xd8] sm:$0xff] }
 0x193   :  { %v314_v33 = vcombine.high %v1011_v30, %v1011_v30  ;;  %v321_v35 = vrot.slane %v1011_v30, %v1385_v29  ;;  %v980_v30 = vpack.c.bf16 %v487_v27, %v485_v26 }
 0x194   :  { %v345_v36 = vrot.slane %v331_v31, %v1385_v29  ;;  %v346_v37 = vcombine.high %v338_v32, %v338_v32  ;;  %v361_v38 = vsel %vm356_vm1, %v338_v32, -inf  ;;  %v982_v31 = vpack.c.bf16 %v492_v0, %v490_v28  ;;  %v489_v32 = vld [vmem:[#allocation10 + $0xc0] sm:$0xff] }
 0x195   :  { %v328_v39 = vrot.slane %v314_v33, %v1385_v29  ;;  %v329_v40 = vcombine.high %v321_v35, %v321_v35  ;;  %v357_v41 = vsel %vm356_vm1, %v321_v35, -inf  ;;  %v491_v33 = vld [vmem:[#allocation10 + $0xd0] sm:$0xff]  ;;  %v494_v35 = vld [vmem:[#allocation10 + $0xe8] sm:$0xff] }
 0x196   :  { %v347_v42 = vcombine.high %v345_v36, %v345_v36  ;;  %v362_v43 = vmax.f32 %v357_v41, %v361_v38  ;;  %v363_v44 = vsel %vm356_vm1, %v346_v37, -inf  ;;  %v365_v45 = vsel %vm356_vm1, %v345_v36, -inf  ;;  %v496_v36 = vld [vmem:[#allocation10 + $0xf8] sm:$0xff] }
 0x197   :  { %v330_v46 = vcombine.high %v328_v39, %v328_v39  ;;  %v358_v47 = vsel %vm356_vm1, %v329_v40, -inf  ;;  %v359_v48 = vsel %vm356_vm1, %v328_v39, -inf  ;;  %v984_v37 = vpack.c.bf16 %v491_v33, %v489_v32  ;;  %v493_v39 = vld [vmem:[#allocation10 + $0xe0] sm:$0xff]  ;;  %v495_v40 = vld [vmem:[#allocation10 + $0xf0] sm:$0xff] }
 0x198   :  { %v364_v49 = vmax.f32 %v358_v47, %v363_v44  ;;  %v366_v50 = vmax.f32 %v359_v48, %v365_v45  ;;  %v367_v51 = vsel %vm356_vm1, %v347_v42, -inf  ;;  %v986_v38 = vpack.c.bf16 %v496_v36, %v494_v35  ;;  %v711_v44 = vld [vmem:[%s1451_s7] ss:$0 sm:$0xff]  ;;  %s1144_s7 = scalar_lea.vmem %s692_s24, 256 }
 0x199   :  { %v360_v52 = vsel %vm356_vm1, %v330_v46, -inf  ;;  %v988_v41 = vpack.c.bf16 %v495_v40, %v493_v39  ;;  %p1145_p6 = scmp.ne.s32.totalorder %s692_s24, %s1144_s7  ;;  %p1150_p8 = scmp.lt.s32.totalorder %s1144_s7, %s1144_s7 }
 0x19a   :  { %v368_v53 = vmax.f32 %v360_v52, %v367_v51  ;;  %v369_v54 = vmax.f32 %v362_v43, %v364_v49 }
 0x19b   :  { %p1151_p9 = por %p1150_p8, %p1149_p7 }
 0x19c   :  { %v370_v59 = vmax.f32 %v366_v50, %v368_v53 }
 0x19d   :  { %p1152_p10 = pnand %p1151_p9, %p1145_p6 }
 0x19e   :  { %v371_v61 = vmax.f32 %v369_v54, %v370_v59 }
 0x1a0   :  { %868 = vmatmul.mubr.f32.vlgmr.msra.gmra.mrb[0].mxu1 %v371_v61 }
 0x1a1   :  { %961 = vmatpush1.bf16.msra.mxu1 %v960_v60  ;;  %561 = vmatprep.mubr.f32.mxu1 %v1212_v12 }
 0x1a2   :  { %963 = vmatprep.subr.bf16.mxu1 %v962_v62 }
 0x1a5   :  { %965 = vmatpush1.bf16.msra.mxu1 %v964_v4 }
 0x1a6   :  { %967 = vmatprep.subr.bf16.mxu1 %v966_v5 }
 0x1a9   :  { %969 = vmatpush1.bf16.msra.mxu1 %v968_v11 }
 0x1aa   :  { %971 = vmatprep.subr.bf16.mxu1 %v970_v13 }
 0x1ad   :  { %973 = vmatpush1.bf16.msra.mxu1 %v972_v18 }
 0x1ae   :  { %975 = vmatprep.subr.bf16.mxu1 %v974_v19 }
 0x1b1   :  { %977 = vmatpush1.bf16.msra.mxu1 %v976_v24 }
 0x1b2   :  { %979 = vmatprep.subr.bf16.mxu1 %v978_v25 }
 0x1b5   :  { %981 = vmatpush1.bf16.msra.mxu1 %v980_v30 }
 0x1b6   :  { %983 = vmatprep.subr.bf16.mxu1 %v982_v31 }
 0x1b9   :  { %985 = vmatpush1.bf16.msra.mxu1 %v984_v37 }
 0x1ba   :  { %987 = vmatprep.subr.bf16.mxu1 %v986_v38 }
 0x1bd   :  { %989 = vmatpush1.bf16.msra.mxu1 %v988_v41 }
 0x1c0   :  { %562 = vmatmul.mubr.f32.vlgmr.msra.gmra.mrb[2].mxu1 %v1368_v10 }
 0x1c1   :  { %567 = vmatprep.mubr.f32.mxu1 %v1212_v12 }
 0x1c4   :  { %568 = vmatmul.mubr.f32.gmra.mrb[4].mxu1 %v1372_v34 }
 0x273   :  { %v461_v42 = vpop.f32.mrb[0].mxu1 }
 0x274   :  { %v869_v43 = vpop.f32.mrb[1].mxu1  ;;  %v462_v46 = vadd.f32 %v711_v44, %v461_v42 }
 0x293   :  { %v563_v45 = vpop.f32.mrb[2].mxu1 }
 0x294   :  { %v576_v47 = vcombine.high %v563_v45, %v563_v45  ;;  %v583_v48 = vrot.slane %v563_v45, %v1385_v29  ;;  %v565_v49 = vpop.f32.mrb[3].mxu1 }
 0x295   :  { %672 = vst [vmem:[#allocation14] sm:$0xff] %v565_v49 }
 0x296   :  { %v590_v10 = vrot.slane %v576_v47, %v1385_v29  ;;  %v591_v12 = vcombine.high %v583_v48, %v583_v48  ;;  %v618_v50 = vadd.f32 %v583_v48, %v462_v46 }
 0x297   :  { %v569_v34 = vpop.f32.mrb[4].mxu1 }
 0x298   :  { %v592_v51 = vcombine.high %v590_v10, %v590_v10  ;;  %v619_v52 = vadd.f32 %v591_v12, %v462_v46  ;;  %v620_v53 = vadd.f32 %v590_v10, %v462_v46  ;;  %v593_v54 = vcombine.high %v569_v34, %v569_v34  ;;  %v571_v55 = vpop.f32.mrb[5].mxu1 }
 0x299   :  { %v600_v56 = vrot.slane %v569_v34, %v1385_v29  ;;  %673 = vst [vmem:[#allocation14 + $0x8] sm:$0xff] %v571_v55 }
 0x29a   :  { %v621_v57 = vadd.f32 %v592_v51, %v462_v46  ;;  %v634_v58 = vcombine.low %v618_v50, %v619_v52  ;;  %v607_v59 = vrot.slane %v593_v54, %v1385_v29 }
 0x29b   :  { %1155 = shalt.err (!%p1152_p10)
}
 0x29c   :  { %s1156_s3 = scalar_lea.hbm %s1453_s9, 256 }
 0x29d   :  { %p1157_p11 = scmp.ne.s32.totalorder %s1453_s9, %s1156_s3  ;;  %p1160_p12 = scmp.lt.u32.totalorder %s1156_s3, %s1453_s9 }
 0x29f   :  { %p1162_p13 = pnand %p1160_p12, %p1157_p11 }
 0x2a1   :  { %1165 = shalt.err (!%p1162_p13)
}
 0x2a2   :  { %697 = dma.vmem_to_hbm [thread:$0]  %s692_s24, 256, %s1453_s9, [#allocation15], %s1202_s21, %s1202_s21, %s1203_s22   ;;  %v608_v60 = vcombine.high %v600_v56, %v600_v56  ;;  %v622_v61 = vadd.f32 %v600_v56, %v462_v46  ;;  %v635_v62 = vcombine.low %v620_v53, %v621_v57  ;;  %v609_v63 = vcombine.high %v607_v59, %v607_v59 }
 0x2a3   :  { %v624_v1 = vadd.f32 %v607_v59, %v462_v46  ;;  %v642_v4 = vrot.slane %v634_v58, %v1385_v29  ;;  %s1215_s30 = smov [#allocation13]  }
 0x2a4   :  { %v623_v2 = vadd.f32 %v608_v60, %v462_v46  ;;  %v625_v3 = vadd.f32 %v609_v63, %v462_v46  ;;  %v649_v5 = vrot.slane %v635_v62, %v1385_v29  ;;  %s679_s11 = sshll.u32 %s1215_s30, 4  ;;  %s680_s11 = int_to_ptr.vmem [resolvable:$true] %s679_s11 }
 0x2a5   :  { %s1166_s9 = scalar_lea.vmem %s680_s11, 256  ;;  %p1171_p1 = scmp.lt.s32.totalorder %s680_s11, %s680_s11 }
 0x2a6   :  { %v651_v6 = vcombine.low %v622_v61, %v623_v2  ;;  %v652_v7 = vcombine.low %v624_v1, %v625_v3  ;;  %v650_v8 = vcombine.low %v642_v4, %v649_v5  ;;  %p1167_p0 = scmp.ne.s32.totalorder %s680_s11, %s1166_s9  ;;  %p1172_p2 = scmp.lt.s32.totalorder %s1166_s9, %s1166_s9 }
 0x2a8   :  { %v659_v9 = vrot.slane %v651_v6, %v1385_v29  ;;  %v666_v11 = vrot.slane %v652_v7, %v1385_v29  ;;  %670 = vst [vmem:[#allocation13] sm:$0xff] %v650_v8  ;;  %p1173_p3 = por %p1172_p2, %p1171_p1 }
 0x2aa   :  { %v667_v13 = vcombine.low %v659_v9, %v666_v11  ;;  %p1174_p4 = pnand %p1173_p3, %p1167_p0 }
 0x2ac   :  { %671 = vst [vmem:[#allocation13 + $0x8] sm:$0xff] %v667_v13 }
 0x2ad   :  { %1177 = shalt.err (!%p1174_p4)
}
 0x2ae   :  { %s1178_s10 = scalar_lea.hbm %s1452_s8, 256 }
 0x2af   :  { %p1179_p5 = scmp.ne.s32.totalorder %s1452_s8, %s1178_s10  ;;  %p1182_p6 = scmp.lt.u32.totalorder %s1178_s10, %s1452_s8 }
 0x2b1   :  { %p1184_p7 = pnand %p1182_p6, %p1179_p5 }
 0x2b3   :  { %1187 = shalt.err (!%p1184_p7)
}
 0x2b4   :  { %685 = dma.vmem_to_hbm [thread:$0]  %s680_s11, 256, %s1452_s8, [#allocation4], %s1202_s21, %s1202_s21, %s1203_s22  }
 0x2b5   :  { %1196 = dma.done.wait [#allocation4], 256  }
 0x2b6   :  { %1197 = vsyncadd [#allocation4], 4294967040 }
 0x2b7   :  { %1198 = dma.done.wait [#allocation15], 256  }
 0x2b8   :  { %1199 = vsyncadd [#allocation15], 4294967040 }
 0x2b9   :  { %704 = vsyncpa [#allocation3], 1 }
 0x2ba   :  { %705 = vsyncpa [#allocation6], 1 }
 0x2bb   :  { %706 = vsyncpa [#allocation9], 1 }
 0x2bc   :  { %707 = vsyncpa [#allocation12], 1 }
 0x2bd   :  { %708 = vsyncpa [#allocation4], 1 }
 0x2be   :  { %709 = vsyncpa [#allocation15], 1 }

</bundles_post_ra>
